<compile_context>
chip_gen: v6e
topology: v6e:2x2x1
jax: 0.10.0
libtpu: 0.0.40
codegen_flags: <defaults>
</compile_context>

<pallas_src>
import functools

import jax
import jax.numpy as jnp
from jax.experimental import pallas as pl
from jax.experimental.pallas import tpu as pltpu


def _pos_emb_dma_kernel(seq, emb_hbm_ref, out_hbm_ref, copy_sem):
    """Single HBM->HBM DMA of the first `seq` rows of the embedding table.

    emb_hbm_ref : raw HBM ref, shape (max_seq_len, dim)
    out_hbm_ref : raw HBM ref, shape (seq, dim)
    copy_sem    : DMA semaphore scratch
    """
    copy = pltpu.make_async_copy(
        emb_hbm_ref.at[pl.ds(0, seq), :],   # contiguous row slice of table
        out_hbm_ref,
        copy_sem,
    )
    copy.start()
    copy.wait()


def absolute_positional_embedding(x, emb_weight):
    """x: (batch, seq) — only x.shape[1] is used (like the PyTorch module).
       emb_weight: (max_seq_len, dim).
       Returns (1, seq, dim) with emb_weight's dtype."""
    seq = x.shape[1]
    max_seq_len, dim = emb_weight.shape
    assert seq <= max_seq_len

    itemsize = jnp.dtype(emb_weight.dtype).itemsize

    out_2d = pl.pallas_call(
        functools.partial(_pos_emb_dma_kernel, seq),
        out_shape=jax.ShapeDtypeStruct((seq, dim), emb_weight.dtype),
        grid_spec=pltpu.PrefetchScalarGridSpec(
            num_scalar_prefetch=0,
            grid=(),                                   # body runs once
            in_specs=[pl.BlockSpec(memory_space=pl.ANY)],   # raw HBM ref
            out_specs=pl.BlockSpec(memory_space=pl.ANY),    # raw HBM ref
            scratch_shapes=[pltpu.SemaphoreType.DMA(())],
        ),
        cost_estimate=pl.CostEstimate(
            flops=0,
            transcendentals=0,
            bytes_accessed=2 * seq * dim * itemsize,   # read + write
        ),
    )(emb_weight)

    # PyTorch returns emb(n)[None, :, :]; the expand is a free reshape.
    return out_2d[None, :, :]


if __name__ == "__main__":
    key = jax.random.PRNGKey(0)
    k_emb, k_x = jax.random.split(key)

    MAX_SEQ_LEN = 64
    DIM = 128
    BATCH = 2
    SEQ = 16

    # deterministic parameter init: nn.init.normal_(weight, std=0.02)
    emb_weight = (jax.random.normal(k_emb, (MAX_SEQ_LEN, DIM), jnp.float32)
                  * 0.02)

    # x is only inspected for its sequence length (shape[1]) in forward()
    x = jax.random.randint(k_x, (BATCH, SEQ), 0, MAX_SEQ_LEN, jnp.int32)

    out = absolute_positional_embedding(x, emb_weight)
    out = jax.block_until_ready(out)

    # reference: emb(arange(seq))[None, :, :]
    ref = emb_weight[jnp.arange(SEQ)][None, :, :]
    assert out.shape == (1, SEQ, DIM)
    assert out.dtype == emb_weight.dtype
    assert jnp.array_equal(out, ref), "mismatch vs reference embedding lookup"

    print("KERNEL_OK")
</pallas_src>

<mosaic_0001>
module attributes {stable_mosaic.version = 11 : i64} {
  func.func @_pos_emb_dma_kernel(%arg0: memref<64x128xf32, #tpu.memory_space<any>>, %arg1: memref<16x128xf32, #tpu.memory_space<any>>, %arg2: memref<!tpu.dma_semaphore, #tpu.memory_space<semaphore_mem>>) attributes {dimension_semantics = [], scalar_prefetch = 0 : i64, scratch_operands = 1 : i64, tpu.core_type = #tpu.core_type<tc>} {
    %c0_i32 = arith.constant 0 : i32
    %c0_i32_0 = arith.constant 0 : i32
    %0 = tpu.memref_slice %arg0[%c0_i32, %c0_i32_0] : memref<64x128xf32, #tpu.memory_space<any>> -> memref<16x128xf32, #tpu.memory_space<any>>
    tpu.enqueue_dma source(%0 : memref<16x128xf32, #tpu.memory_space<any>>) target(%arg1 : memref<16x128xf32, #tpu.memory_space<any>>) target_semaphore(%arg2 : memref<!tpu.dma_semaphore, #tpu.memory_space<semaphore_mem>>)
    %c0_i32_1 = arith.constant 0 : i32
    %c0_i32_2 = arith.constant 0 : i32
    %1 = tpu.memref_slice %arg0[%c0_i32_1, %c0_i32_2] : memref<64x128xf32, #tpu.memory_space<any>> -> memref<16x128xf32, #tpu.memory_space<any>>
    tpu.wait_dma2 semaphore(%arg2 : memref<!tpu.dma_semaphore, #tpu.memory_space<semaphore_mem>>) src(%1 : memref<16x128xf32, #tpu.memory_space<any>>) dst(%arg1 : memref<16x128xf32, #tpu.memory_space<any>>)
    return
  }
}

</mosaic_0001>

<bundles_post_ra>
// kernel: tpu_custom_call.1
= control target key start
LH: loop header
LB: loop body
LE: loop exit
PB: predicated region body
PF: predicated region fallthrough
CT: control target
= control target key end

     0   :  { %s28_s6 = smov [#allocation2]   ;;  %s29_s7 = smov 131072   ;;  %s47_s0 = inlined_call_operand.hbm [shape: f32[64,128], index: 0, kind: input, shape index: {}]   ;;  %s48_s1 = inlined_call_operand.hbm [shape: f32[16,128], index: 1, kind: output, shape index: {}]  }
   0x1   :  { %s30_s8 = smov 0  }
   0x2   :  { %12 = dma.general %s47_s0, 256, %s48_s1, %s28_s6, %s29_s7, [#allocation4], %s30_s8, 0  }
   0x3   :  { %26 = dma.done.wait [#allocation2], 256 }
   0x4   :  { %27 = vsyncadd [#allocation2], 4294967040 }
   0x5   :  { %16 = vsyncmov [#allocation2] }
   0x8   :  { %s17_s13 = vpop.sfrf %16 }
   0x9   :  { %p22_p0 = scmp.ne.s32.totalorder %s17_s13, 0 }
   0xb   :  { %21 = shalt.err (%p22_p0)  }

</bundles_post_ra>
